<compile_context>
chip_gen: v7x
topology: tpu7x:2x2x1
jax: 0.10.0
libtpu: 0.0.40
codegen_flags: <defaults>
</compile_context>

<pallas_src>
import math

import jax
import jax.numpy as jnp
from jax import lax
from jax.experimental import pallas as pl
from jax.experimental.pallas import tpu as pltpu


def conv1d_in_kernel(m_ref, wcat_ref, bv_ref, out_ref):
    # m_ref:    (TB*R, C)     pre-flattened batch-rows slab
    # wcat_ref: (C, N+D)      fused [W_k^T | W_v^T]
    # bv_ref:   (1, D)        project_v bias (added post-contraction; exact)
    # out_ref:  (TB, 1, N*D)  lane-dense output slab
    rows, _ = m_ref.shape
    n_plus_d = wcat_ref.shape[1]
    D = bv_ref.shape[1]
    N = n_plus_d - D
    TB = out_ref.shape[0]
    R = rows // TB
    cdt = m_ref.dtype  # native compute dtype for MXU operands (bf16 stays bf16)

    # Single fused projection matmul, f32 accumulation.
    p = jnp.dot(m_ref[...], wcat_ref[...],
                preferred_element_type=jnp.float32)              # (TB*R, N+D)

    # Static column split + leading-dim split (relabels when R % 8 == 0).
    logits = p[:, :N].reshape(TB, R, N)                          # f32
    v = p[:, N:].reshape(TB, R, D)                               # f32

    # Unnormalized softmax over R (axis=1), f32 math.
    # b_k is omitted: constant along R, cancels exactly in the softmax.
    mx = jnp.max(logits, axis=1, keepdims=True)                  # (TB, 1, N)
    e = jnp.exp(logits - mx)                                     # (TB, R, N)
    denom = jnp.sum(e, axis=1, keepdims=True)                    # (TB, 1, N)

    # einsum('bnr,brd->bnd') with UNNORMALIZED weights, contracting R directly
    # (batch dim 0, contracting dim 1 on both operands -> no transpose of e).
    out_unnorm = lax.dot_general(
        e.astype(cdt), v.astype(cdt),
        dimension_numbers=(((1,), (1,)), ((0,), (0,))),
        preferred_element_type=jnp.float32)                      # (TB, N, D)

    # Normalize on the small (N, D) result; approx reciprocal uses the EUP slot
    # (denom >= 1 after max-subtraction, so the ~2^-12 rel. error is benign).
    inv = pl.reciprocal(denom, approx=True)                      # (TB, 1, N)
    out = out_unnorm * jnp.swapaxes(inv, 1, 2) + bv_ref[...]     # (TB, N, D)

    # Lane-dense store: merge (N, D) -> N*D lanes.
    out_ref[...] = out.reshape(TB, 1, N * D).astype(out_ref.dtype)


def _padded_bytes(rows, cols, itemsize):
    """VMEM footprint of a (rows, cols) tile after sublane/lane padding."""
    sub = 8 * max(1, 4 // itemsize)                # 8 (f32), 16 (bf16), 32 (int8)
    pr = -(-rows // sub) * sub
    pc = -(-cols // 128) * 128
    return pr * pc * itemsize


def _vmem_plan():
    """(vmem_limit_bytes, per-step working-set budget), generation-aware."""
    try:
        cap = getattr(pltpu.get_tpu_info(), "vmem_capacity_bytes",
                      64 * 1024 * 1024)
    except Exception:
        cap = 64 * 1024 * 1024                     # conservative fallback
    if cap >= 128 * 1024 * 1024:
        limit = 64 * 1024 * 1024                   # v5e / v6e (128 MiB physical)
    else:
        # v7x: 64 MiB per TensorCore -> stay well below it.
        limit = max(32 * 1024 * 1024, min(40 * 1024 * 1024, cap * 5 // 8))
    return limit, (limit * 3) // 4


def _pick_tb(B, R, C, N, D, in_itemsize, out_itemsize, budget_bytes):
    """Largest power-of-two batch slab whose PADDED VMEM footprint fits the budget."""

    def footprint(tb):
        f = 2 * _padded_bytes(tb * R, C, in_itemsize)             # 2x-buffered m slab
        f += 2 * _padded_bytes(C, N + D, in_itemsize)             # resident fused weights
        f += 2 * _padded_bytes(1, D, 4)                           # bias
        f += _padded_bytes(tb * R, N + D, 4)                      # fused matmul result
        f += 2 * tb * _padded_bytes(R, N, 4)                      # logits slice + exp
        f += tb * _padded_bytes(R, D, 4)                          # v slice
        f += tb * (_padded_bytes(R, N, in_itemsize)
                   + _padded_bytes(R, D, in_itemsize))            # compute-dtype casts
        f += 2 * tb * _padded_bytes(N, D, 4)                      # (N,D) result + normalized
        f += 2 * tb * _padded_bytes(1, N * D, out_itemsize)       # 2x-buffered out slab
        return f

    tb = 1
    while 2 * tb <= B and footprint(2 * tb) <= budget_bytes:
        tb *= 2

    # Keep >= 2 grid steps so both v7x TensorCores get work and the DMA pipeline
    # has iterations to overlap.
    tb = min(tb, max(1, -(-B // 2)))

    # The (tb*R, C) m block needs tb*R % sublane == 0 unless it spans the whole
    # (padded) array; round tb to the required multiple.
    sub_req = 8 * max(1, 4 // in_itemsize)
    sub_m = sub_req // math.gcd(R, sub_req)
    if tb < B and tb % sub_m:
        tb_aligned = (tb // sub_m) * sub_m
        tb = tb_aligned if tb_aligned >= 1 else min(sub_m, B)
    return max(1, tb)


def conv1d_in(m, w_k, b_k, w_v, b_v):
    """m: (B, R, C_in); w_k: (N, C_in); b_k: (N,); w_v: (D, C_in); b_v: (D,)."""
    del b_k  # constant along the softmax axis R -> zero effect on the output (exact)
    B, R, C = m.shape
    N = w_k.shape[0]
    D = w_v.shape[0]

    # One-time layout plumbing outside the kernel: fuse both projections into a
    # single (C, N+D) weight with the contracting dim (C) leading, in m's dtype.
    w_cat = jnp.concatenate([jnp.asarray(w_k).T, jnp.asarray(w_v).T],
                            axis=1).astype(m.dtype)              # (C, N+D)
    bv2 = b_v.reshape(1, D).astype(jnp.float32)

    vmem_limit, budget = _vmem_plan()
    TB = _pick_tb(B, R, C, N, D, m.dtype.itemsize, m.dtype.itemsize, budget)

    grid = -(-B // TB)                 # cdiv: TB need not divide B
    B_pad = grid * TB

    # Pre-flatten rows so the kernel never reshapes the m slab; zero-pad any
    # partial final batch block (padded outputs are finite and sliced away).
    m_flat = m.reshape(B * R, C)
    if B_pad != B:
        m_flat = jnp.pad(m_flat, ((0, (B_pad - B) * R), (0, 0)))

    out = pl.pallas_call(
        conv1d_in_kernel,
        out_shape=jax.ShapeDtypeStruct((B_pad, 1, N * D), m.dtype),
        grid_spec=pltpu.PrefetchScalarGridSpec(
            num_scalar_prefetch=0,
            grid=(grid,),
            in_specs=[
                pl.BlockSpec((TB * R, C), lambda b: (b, 0)),     # m slab (flattened rows)
                pl.BlockSpec((C, N + D), lambda b: (0, 0)),      # fused weights (resident)
                pl.BlockSpec((1, D), lambda b: (0, 0)),          # b_v
            ],
            out_specs=pl.BlockSpec((TB, 1, N * D), lambda b: (b, 0, 0)),
        ),
        compiler_params=pltpu.CompilerParams(
            dimension_semantics=("parallel",),
            vmem_limit_bytes=vmem_limit,
        ),
    )(m_flat, w_cat, bv2)

    return out.reshape(B_pad, N, D)[:B]


def conv1d_in_ref(m, w_k, b_k, w_v, b_v):
    """Pure-JAX reference mirroring the PyTorch forward."""
    logits = jnp.einsum('brc,nc->brn', m, w_k) + b_k             # (B, R, N)
    k = jax.nn.softmax(jnp.swapaxes(logits, -1, -2), axis=-1)    # (B, N, R)
    v = jnp.einsum('brc,dc->brd', m, w_v) + b_v                  # (B, R, D)
    return jnp.einsum('bnr,brd->bnd', k, v)                      # (B, N, D)


if __name__ == "__main__":
    # Small shapes consistent with the module's forward (channel-last input).
    B, R, IN_DIM = 2, 16, 8     # m: (batch, positions, in_dim)
    NUM_NODES, OUT_DIM = 4, 8

    key = jax.random.PRNGKey(0)
    km, kwk, kbk, kwv, kbv = jax.random.split(key, 5)

    m = jax.random.normal(km, (B, R, IN_DIM), dtype=jnp.float32)

    # Conv1d kernel_size=1 weights, squeezed to (out, in); PyTorch-style uniform init.
    bound = 1.0 / (IN_DIM ** 0.5)
    w_k = jax.random.uniform(kwk, (NUM_NODES, IN_DIM), minval=-bound, maxval=bound)
    b_k = jax.random.uniform(kbk, (NUM_NODES,), minval=-bound, maxval=bound)
    w_v = jax.random.uniform(kwv, (OUT_DIM, IN_DIM), minval=-bound, maxval=bound)
    b_v = jax.random.uniform(kbv, (OUT_DIM,), minval=-bound, maxval=bound)

    out = conv1d_in(m, w_k, b_k, w_v, b_v)
    out = jax.block_until_ready(out)

    ref = conv1d_in_ref(m, w_k, b_k, w_v, b_v)
    assert out.shape == (B, NUM_NODES, OUT_DIM), out.shape
    # Tolerance accounts for the EUP approximate reciprocal in the softmax denominator.
    assert jnp.allclose(out, ref, atol=1e-3, rtol=1e-3), float(jnp.max(jnp.abs(out - ref)))

    print("KERNEL_OK")
</pallas_src>

<mosaic_0001>
module attributes {stable_mosaic.version = 11 : i64} {
  func.func @conv1d_in_kernel(%arg0: i32, %arg1: memref<16x8xf32, #tpu.memory_space<vmem>>, %arg2: memref<8x12xf32, #tpu.memory_space<vmem>>, %arg3: memref<1x8xf32, #tpu.memory_space<vmem>>, %arg4: memref<1x1x32xf32, #tpu.memory_space<vmem>>) attributes {dimension_semantics = [#tpu.dimension_semantics<parallel>], iteration_bounds = array<i64: 2>, scalar_prefetch = 0 : i64, scratch_operands = 0 : i64, tpu.core_type = #tpu.core_type<tc>, window_params = [{transform_indices = @transform_0, window_bounds = array<i64: 16, 8>}, {pipeline_mode = #tpu.pipeline_mode<synchronous>, transform_indices = @transform_1, window_bounds = array<i64: 8, 12>}, {pipeline_mode = #tpu.pipeline_mode<synchronous>, transform_indices = @transform_2, window_bounds = array<i64: 1, 8>}, {transform_indices = @transform_3, window_bounds = array<i64: 1, 1, 32>}]} {
    %c0 = arith.constant 0 : index
    %c0_0 = arith.constant 0 : index
    %0 = vector.load %arg1[%c0, %c0_0] : memref<16x8xf32, #tpu.memory_space<vmem>>, vector<16x8xf32>
    %c0_1 = arith.constant 0 : index
    %c0_2 = arith.constant 0 : index
    %1 = vector.load %arg2[%c0_1, %c0_2] : memref<8x12xf32, #tpu.memory_space<vmem>>, vector<8x12xf32>
    %cst = arith.constant dense<0.000000e+00> : vector<16x12xf32>
    %2 = tpu.matmul %0, %1, %cst {dimension_numbers = #tpu.dot_dimension_numbers<[1], [0], [0], [1], [0, 0, 1, 1], [], []>} : vector<16x8xf32>, vector<8x12xf32>, vector<16x12xf32> -> vector<16x12xf32>
    %3 = vector.extract_strided_slice %2 {offsets = [0, 0], sizes = [16, 4], strides = [1, 1]} : vector<16x12xf32> to vector<16x4xf32>
    %4 = vector.shape_cast %3 : vector<16x4xf32> to vector<1x16x4xf32>
    %5 = vector.extract_strided_slice %2 {offsets = [0, 4], sizes = [16, 8], strides = [1, 1]} : vector<16x12xf32> to vector<16x8xf32>
    %6 = vector.shape_cast %5 : vector<16x8xf32> to vector<1x16x8xf32>
    %cst_3 = arith.constant dense<0xFF800000> : vector<1x4xf32>
    %7 = vector.multi_reduction <maximumf>, %4, %cst_3 [1] : vector<1x16x4xf32> to vector<1x4xf32>
    %8 = vector.shape_cast %7 : vector<1x4xf32> to vector<1x1x4xf32>
    %9 = vector.broadcast %8 : vector<1x1x4xf32> to vector<1x16x4xf32>
    %10 = arith.subf %4, %9 : vector<1x16x4xf32>
    %11 = math.exp %10 : vector<1x16x4xf32>
    %cst_4 = arith.constant dense<0.000000e+00> : vector<1x4xf32>
    %12 = vector.multi_reduction <add>, %11, %cst_4 [1] : vector<1x16x4xf32> to vector<1x4xf32>
    %13 = vector.shape_cast %12 : vector<1x4xf32> to vector<1x1x4xf32>
    %cst_5 = arith.constant dense<0.000000e+00> : vector<1x4x8xf32>
    %14 = tpu.matmul %11, %6, %cst_5 {dimension_numbers = #tpu.dot_dimension_numbers<[1], [1], [2], [2], [0, 0, 0, 2, 1, 2], [0], [0]>} : vector<1x16x4xf32>, vector<1x16x8xf32>, vector<1x4x8xf32> -> vector<1x4x8xf32>
    %15 = tpu.reciprocal %13 {approx = true} : vector<1x1x4xf32> -> vector<1x1x4xf32>
    %16 = tpu.transpose %15, [0, 2, 1] : vector<1x1x4xf32> -> vector<1x4x1xf32>
    %17 = vector.broadcast %16 : vector<1x4x1xf32> to vector<1x4x8xf32>
    %18 = arith.mulf %14, %17 : vector<1x4x8xf32>
    %c0_6 = arith.constant 0 : index
    %c0_7 = arith.constant 0 : index
    %19 = vector.load %arg3[%c0_6, %c0_7] : memref<1x8xf32, #tpu.memory_space<vmem>>, vector<1x8xf32>
    %20 = vector.shape_cast %19 : vector<1x8xf32> to vector<1x1x8xf32>
    %21 = vector.broadcast %20 : vector<1x1x8xf32> to vector<1x4x8xf32>
    %22 = arith.addf %18, %21 : vector<1x4x8xf32>
    %23 = vector.shape_cast %22 : vector<1x4x8xf32> to vector<1x1x32xf32>
    %c0_8 = arith.constant 0 : index
    %c0_9 = arith.constant 0 : index
    %c0_10 = arith.constant 0 : index
    %24 = vector.load %arg4[%c0_8, %c0_9, %c0_10] : memref<1x1x32xf32, #tpu.memory_space<vmem>>, vector<1x1x32xf32>
    tpu.vector_store %arg4[%c0_8, %c0_9, %c0_10], %23 {strides = array<i32>} : memref<1x1x32xf32, #tpu.memory_space<vmem>>, vector<1x1x32xf32>,
    return
  }
  func.func @transform_0(%arg0: i32) -> (i32, i32) {
    %c0_i32 = arith.constant 0 : i32
    %c0_i32_0 = arith.constant 0 : i32
    return %arg0, %c0_i32 : i32, i32
  }
  func.func @transform_1(%arg0: i32) -> (i32, i32) {
    %c0_i32 = arith.constant 0 : i32
    %c0_i32_0 = arith.constant 0 : i32
    %c0_i32_1 = arith.constant 0 : i32
    return %c0_i32, %c0_i32_0 : i32, i32
  }
  func.func @transform_2(%arg0: i32) -> (i32, i32) {
    %c0_i32 = arith.constant 0 : i32
    %c0_i32_0 = arith.constant 0 : i32
    %c0_i32_1 = arith.constant 0 : i32
    return %c0_i32, %c0_i32_0 : i32, i32
  }
  func.func @transform_3(%arg0: i32) -> (i32, i32, i32) {
    %c0_i32 = arith.constant 0 : i32
    %c0_i32_0 = arith.constant 0 : i32
    %c0_i32_1 = arith.constant 0 : i32
    return %arg0, %c0_i32, %c0_i32_0 : i32, i32, i32
  }
}

</mosaic_0001>

<bundles_post_ra>
// kernel: tpu_custom_call.1
= control target key start
LH: loop header
LB: loop body
LE: loop exit
PB: predicated region body
PF: predicated region fallthrough
CT: control target
= control target key end

     0   :  { %8 = vsyncpa [#allocation3], 0  ;;  %s860_s0 = inlined_call_operand.vmem [shape: f32[32,8], index: 0, kind: input, shape index: {}]   ;;  %s861_s1 = inlined_call_operand.vmem [shape: f32[8,12], index: 1, kind: input, shape index: {}]   ;;  %s862_s2 = inlined_call_operand.vmem [shape: f32[1,8], index: 2, kind: input, shape index: {}]   ;;  %s863_s3 = inlined_call_operand.hbm [shape: f32[2,1,32], index: 3, kind: output, shape index: {}]  }
   0x1   :  { %10 = vsyncpa [#allocation3 + $0x1], 0  ;;  %s742_s12 = smov 0   ;;  %s744_s13 = smov 0  }
   0x2   :  { %s746_s14 = smov 0   ;;  %s748_s15 = smov 0  }
   0x3 LB: > { %s763_s16 = sadd.s32 4294967295, %s709_s15   ;;  %s551_s17 = sadd.s32 4294967294, %s709_s15   ;;  %s709_s15 = sphi %s748_s15, %s869_s15   ;;  %s705_s14 = sphi %s746_s14, %s868_s14   ;;  %s701_s13 = sphi %s744_s13, %s867_s13   ;;  %s697_s12 = sphi %s742_s12, %s866_s12  }
   0x4   : > { %s767_s18 = sadd.s32 1, %s709_s15   ;;  %s91_s19 = sadd.s32 1, %s705_s14 }
   0x5   : > { %s88_s20 = ssub.s32 %s709_s15, %s767_s18  ;;  %p101_p0 = scmp.ne.s32.totalorder %s705_s14, %s701_s13 }
   0x6   : > { %p89_p1 = scmp.eq.s32.totalorder %s88_s20, 0  ;;  %p102_p2 = scmp.eq.s32.totalorder %s763_s16, 1 }
   0x7   : > { %p107_p3 = scmp.ne.s32.totalorder %s701_s13, %s697_s12  ;;  %p108_p4 = scmp.eq.s32.totalorder %s551_s17, 1 }
   0x8   : > { %s778_s21 = scalar_select %p89_p1, %s705_s14, %s91_s19  }
   0x9   : > { %p780_p5 = por %p102_p2, %p101_p0  ;;  %p784_p6 = por %p108_p4, %p107_p3 }
   0xa   : > { %p554_p7 = scmp.ge.s32.totalorder %s709_s15, 1  ;;  %p141_p8 = scmp.lt.s32.totalorder %s709_s15, 3 }
   0xc   : > { %p142_p9 = pnand %p554_p7, %p141_p8 }
   0xd   : > { %v172_v0 = vld [vmem:[%s861_s1] sm:$0xff] (!%p142_p9)  ;;  %s555_s26 = sshll.u32 (!%p142_p9), %s763_s16, 1  ;;  %vm173_vm0 = vcmask (!%p142_p9), 64512   ;;  %v711_v3 = vmov (!%p142_p9), 0.0|0.0   ;;  %vm712_vm1 = vmmov (!%p142_p9), 0   ;;  %v713_v4 = vmov (!%p142_p9), 0.0  }
   0xe   : > { %145 = sbr.rel (%p142_p9) target bundleno = 756 (0x2f4), region = 32  ;;  %570 = vmatprep.subr.mxu0 (!%p142_p9), %v172_v0  ;;  %p165_p10 = scmp.lt.s32.totalorder (!%p142_p9), %s555_s26, 3  ;;  %582 = vmatprep.subr.bf16.mxu1 (!%p142_p9), %v711_v3  ;;  %vm255_vm2 = vcmask (!%p142_p9), 31744   ;;  %v715_v33 = vmov (!%p142_p9), 0   ;;  %vm320_vm3 = vcmask (!%p142_p9), 130048   ;;  %v444_v42 = vlaneseq (!%p142_p9) }
   0xf   : > { %571 = vmatpush3.msra.mxu0 (!%p142_p9), %v172_v0  ;;  %579 = vmatprep.mubr.msk.f32.mxu1 (!%p142_p9), %vm712_vm1, %v713_v4  ;;  %s714_s4 = smov (!%p142_p9), 124   ;;  %v716_v40 = vmov (!%p142_p9), 1983009808   ;;  %v717_v43 = vmov (!%p142_p9), 1934713408   ;;  %s718_s7 = smov (!%p142_p9), 8  }
  0x10   : > { %v442_v41 = vunpack.c.l.s4 (!%p142_p9), %v716_v40  ;;  %v450_v44 = vunpack.c.l.s4 (!%p142_p9), %v717_v43  ;;  %v445_v46 = vshrl.u32 (!%p142_p9), %v444_v42, 7  ;;  %v560_v50 = vld [vmem:[%s862_s2] ss:$0 sm:$0xff] (!%p142_p9)  ;;  %s719_s8 = smov (!%p142_p9), 16   ;;  %s720_s9 = smov (!%p142_p9), 24   ;;  %vm479_vm4 = vcmask (!%p142_p9), 195584  }
  0x11   : > { %s162_s10 = sand.u32 (!%p142_p9), 1, %s701_s13   ;;  %s561_s11 = sshll.u32 (!%p142_p9), %s763_s16, 4  ;;  %vm481_vm5 = vcmask (!%p142_p9), 253952  }
  0x12   : > { %v443_v45 = vunpack.c.0.s8 (!%p142_p9), %v442_v41  ;;  %v451_v48 = vunpack.c.0.s8 (!%p142_p9), %v450_v44  ;;  %s163_s17 = scalar_lea.vmem (!%p142_p9), [#allocation2], %s162_s10  ;;  %s818_s25 = scalar_lea.hbm (!%p142_p9), %s863_s3, %s561_s11 }
  0x13   : > { %s496_s19 = sshll.u32 (!%p142_p9), %s163_s17, 4  ;;  %s484_s16 = scalar_lea.sflag (!%p142_p9), [#allocation3], %s162_s10  ;;  %s820_s19 = int_to_ptr.vmem [resolvable:$true] %s496_s19 }
  0x14   : > { %v446_v51 = vsub.s32 (!%p142_p9), %v443_v45, %v445_v46  ;;  %v454_v55 = vsub.s32 (!%p142_p9), %v451_v48, %v445_v46 }
  0x15   : > { %s871_s26 = smov (!%p165_p10, %s555_s26), 3 }
  0x16   : > { %s556_s27 = sshll.u32 %s871_s26, 3  ;;  %s647_s26 = scalar_lea.vmem %s820_s19, 16 }
  0x17   : > { %s168_s30 = scalar_lea.vmem %s860_s0, %s556_s27  ;;  %p648_p11 = scmp.ne.s32.totalorder %s820_s19, %s647_s26 }
  0x18   : > { %v170_v1 = vld [vmem:[%s168_s30] sm:$0xff]  ;;  %v171_v2 = vld [vmem:[%s168_s30 + $0x8] sm:$0xff]  ;;  %s721_s27 = smov [#allocation2]  }
  0x19   : > { %572 = vmatprep.mubr.msk.f32.mxu0 %vm173_vm0, %v170_v1  ;;  %p649_p12 = pnand %p648_p11, %p780_p5  ;;  %s651_s28 = sshll.u32 %s721_s27, 4  ;;  %s652_s28 = int_to_ptr.vmem [resolvable:$false] %s651_s28 }
  0x1a   : > { %573 = vmatmul.mubr.msk.f32.vlgmr.msra.gmra.mrb[0].mxu0 %vm173_vm0, %v171_v2  ;;  %s653_s29 = scalar_lea.vmem %s652_s28, 32  ;;  %p654_p0 = scmp.lt.s32.totalorder %s820_s19, %s652_s28 }
  0x1b   : > { %p650_p13 = pneg %p649_p12  ;;  %p655_p1 = scmp.lt.s32.totalorder %s653_s29, %s647_s26 }
  0x1d   : > { %p656_p2 = por %p655_p1, %p654_p0 }
  0x1f   : > { %p657_p3 = pnand %p656_p2, %p650_p13 }
  0xed   : > { %v574_v5 = vpop.f32.mrb[0].mxu0 }
  0xee   : > { %v257_v6 = vsel %vm255_vm2, %v574_v5, -inf  ;;  %v246_v7 = vpop.f32.mrb[1].mxu0 }
  0xef   : > { %v256_v8 = vsel %vm255_vm2, %v246_v7, -inf  ;;  %v634_v9 = vpack.i.bf16 %v574_v5, %v246_v7 }
  0xf0   : > { %v258_v10 = vmax.f32 %v256_v8, %v257_v6 }
  0xf1   : > { %635 = vrot.lane.b32.xlu0 %v634_v9, %s714_s4 }
  0xf2   : > { %v259_v11 = vrot.slane %v258_v10, 4 }
  0xf4   : > { %v260_v12 = vmax.f32 %v258_v10, %v259_v11 }
  0xf6   : > { %v261_v13 = vrot.slane %v260_v12, 2 }
  0xf8   : > { %v262_v14 = vmax.f32 %v260_v12, %v261_v13 }
  0xfa   : > { %v263_v15 = vrot.slane %v262_v14, 1 }
  0xfc   : > { %v264_v16 = vmax.f32 %v262_v14, %v263_v15 }
  0xfe   : > { %v265_v17 = vsub.f32 %v246_v7, %v264_v16  ;;  %v266_v18 = vsub.f32 %v574_v5, %v264_v16 }
 0x100   : > { %v267_v19 = vmul.f32 1.442695, %v265_v17  ;;  %v269_v20 = vmul.f32 1.442695, %v266_v18 }
 0x102   : > { %641 = vpow2.f32 %v267_v19 }
 0x103   : > { %643 = vpow2.f32 %v269_v20 }
 0x10c   : > { %v642_v21 = vpop.eup %641 }
 0x10d   : > { %v644_v22 = vpop.eup %643  ;;  %v271_v23 = vsel %vm255_vm2, %v642_v21, 0.0 }
 0x10e   : > { %v272_v24 = vsel %vm255_vm2, %v644_v22, 0.0 }
 0x10f   : > { %280 = vxpose.xlu0.b32.start [1/2] (short) (narrow) %v642_v21, 8  ;;  %v273_v25 = vadd.f32 %v272_v24, %v271_v23 }
 0x111   : > { %v274_v26 = vrot.slane %v273_v25, 4 }
 0x113   : > { %281 = vxpose.xlu0.b32.end [2/2] (short) (narrow) %v644_v22, 8  ;;  %v275_v27 = vadd.f32 %v274_v26, %v273_v25 }
 0x115   : > { %v276_v28 = vrot.slane %v275_v27, 2 }
 0x117   : > { %v277_v29 = vadd.f32 %v276_v28, %v275_v27 }
 0x119   : > { %v278_v30 = vrot.slane %v277_v29, 1 }
 0x11b   : > { %v279_v31 = vadd.f32 %v278_v30, %v277_v29 }
 0x11d   : > { %645 = vrcp.f32 %v279_v31 }
 0x127   : > { %v646_v32 = vpop.eup %645 }
 0x128   : > { %395 = vxpose.xlu1.b32.start.end [1/1] (short) (narrow) %v646_v32, 8 }
 0x13c   : > { %640 = vset.pattern.permute.xlu0 %v715_v33 }
 0x146   : > { %639 = vset.pattern.permute.xlu1 %v715_v33 }
 0x163   : > { %v636_v34 = vpop.permute.xlu0 %635 }
 0x164   : > { %v638_v35 = vunpack.i.h.bf16 %v636_v34  ;;  %v637_v36 = vunpack.i.l.bf16 %v636_v34 }
 0x166   : > { %v583_v37 = vpack.c.bf16 %v638_v35, %v637_v36 }
 0x168   : > { %584 = vmatpush3.bf16.msra.mxu1 %v583_v37 }
 0x18f   : > { %v296_v38 = vpop.trf.xlu0 }
 0x190   : > { %580 = vmatmul.mubr.msk.f32.vlgmr.msra.gmra.mrb[0].mxu1 %vm320_vm3, %v296_v38 }
 0x1a8   : > { %v411_v39 = vpop.trf.xlu1 }
 0x1a9   : > { %429 = vperm.xlu1 %639, %v411_v39  }
 0x228   : > { %v430_v47 = vpop.permute.xlu1 %429 }
 0x263   : > { %v390_v49 = vpop.f32.mrb[0].mxu1 }
 0x264   : > { %v432_v52 = vmul.f32 %v430_v47, %v390_v49  ;;  %v581_v53 = vpop.f32.mrb[1].mxu1 }
 0x266   : > { %v440_v54 = vadd.f32 %v560_v50, %v432_v52 }
 0x268   : > { %v447_v56 = vrot.slane %v440_v54, %v446_v51 }
 0x26a   : > { %v455_v57 = vrot.slane %v447_v56, %v454_v55  ;;  %v448_v58 = vcombine.high %v447_v56, %v713_v4 }
 0x26c   : > { %v463_v59 = vcombine.high %v455_v57, %v713_v4  ;;  %v462_v60 = vrot.slane %v448_v58, %v454_v55 }
 0x26e   : > { %466 = vrot.lane.b32.xlu1 %v463_v59, %s718_s7  ;;  %470 = vrot.lane.b32.xlu0 %v462_v60, %s719_s8  ;;  %v464_v61 = vcombine.high %v462_v60, %v713_v4 }
 0x272   : > { %474 = vrot.lane.b32.xlu1 %v464_v61, %s720_s9 }
 0x2e0   : > { %v467_v62 = vpop.permute.xlu1 %466  ;;  %v471_v0 = vpop.permute.xlu0 %470 }
 0x2e1   : > { %v477_v63 = vsel %vm173_vm0, %v455_v57, %v467_v62 }
 0x2e2   : > { %v478_v1 = vsel %vm320_vm3, %v477_v63, %v471_v0 }
 0x2e4   : > { %v475_v2 = vpop.permute.xlu1 %474 }
 0x2e5   : > { %v480_v3 = vsel %vm479_vm4, %v478_v1, %v475_v2 }
 0x2e6   : > { %482 = vst.msk [vmem:[%s163_s17] sm:$0x1] %vm481_vm5, %v480_v3 }
 0x2e7   : > { %660 = shalt.err (!%p657_p3)
}
 0x2e8   : > { %s661_s30 = scalar_lea.hbm %s818_s25, 16  ;;  %s665_s6 = scalar_lea.hbm %s863_s3, 32 }
 0x2e9   : > { %p662_p4 = scmp.ne.s32.totalorder %s818_s25, %s661_s30  ;;  %p666_p9 = scmp.lt.u32.totalorder %s818_s25, %s863_s3 }
 0x2ea   : > { %p667_p10 = scmp.lt.u32.totalorder %s665_s6, %s661_s30  ;;  %p669_p12 = scmp.lt.u32.totalorder %s661_s30, %s818_s25 }
 0x2eb   : > { %p663_p7 = pnand %p662_p4, %p780_p5 }
 0x2ec   : > { %p668_p11 = por %p667_p10, %p666_p9 }
 0x2ed   : > { %p664_p8 = pneg %p663_p7 }
 0x2ee   : > { %p670_p13 = por %p669_p12, %p668_p11 }
 0x2f0   : > { %p671_p0 = pnand %p670_p13, %p664_p8 }
 0x2f2   : > { %674 = shalt.err (!%p671_p0)
}
 0x2f3   : > { %585 = dma.vmem_to_hbm [thread:$0]  (%p780_p5), %s820_s19, 16, %s818_s25, %s484_s16  }
 0x2f4 PF: > { %p591_p1 = scmp.ge.s32.totalorder %s709_s15, 2  ;;  %s508_s9 = sand.u32 1, %s697_s12  }
 0x2f5   : > { %s509_s10 = scalar_lea.sflag [#allocation3], %s508_s9 }
 0x2f6   : > { %p588_p2 = pnand %p591_p1, %p784_p6 }
 0x2f8   : > { %692 = dma.done.wait (!%p588_p2), %s509_s10, 16  }
 0x2f9   : > { %694 = vsyncadd (!%p588_p2), %s509_s10, 4294967280  ;;  %p13_p3 = scmp.ge.s32.totalorder %s767_s18, 4   ;;  %s866_s12 = smov %s701_s13 }
 0x2fa   : > { %s867_s13 = smov %s705_s14  ;;  %s868_s14 = smov %s778_s21 }
 0x2fb   : > { %s869_s15 = smov %s767_s18  ;;  %15 = sbr.rel (!%p13_p3) target bundleno = 3 (0x3), region = 67 }
 0x302   :  { %513 = vsyncpa [#allocation3], 1 }
 0x303   :  { %515 = vsyncpa [#allocation3 + $0x1], 1 }

</bundles_post_ra>
